<compile_context>
chip_gen: v7x
topology: tpu7x:2x2x1
jax: 0.10.0
libtpu: 0.0.40
codegen_flags: <defaults>
</compile_context>

<pallas_src>
import functools

import jax
import jax.numpy as jnp
from jax import lax
from jax.experimental import pallas as pl
from jax.experimental.pallas import tpu as pltpu

LN_EPS = 1e-5   # PyTorch nn.LayerNorm default
_LANE = 128
_SUBLANE = 8


def _round_up(n, m):
    return ((n + m - 1) // m) * m


def _pad2(a, rows, cols):
    return jnp.pad(a, ((0, rows - a.shape[0]), (0, cols - a.shape[1])))


# --------------------------------------------------------------------------- #
# Kernel
# --------------------------------------------------------------------------- #
def _linear_ln_relu(x, w, packed, true_dim):
    """(x @ w + b) -> LayerNorm over the first `true_dim` lanes -> ReLU.

    `packed` is (3, F_pad) f32: rows = (bias, gamma, beta).  Padded lanes of
    w's columns / bias / gamma / beta are exactly zero, so padded activations
    are exactly zero before and after LayerNorm (scale and beta are 0 there)
    and the sums divided by the true feature count equal unpadded statistics.
    """
    h = jnp.dot(x, w, preferred_element_type=jnp.float32) + packed[0:1, :]
    inv_n = jnp.float32(1.0 / true_dim)
    mean = jnp.sum(h, axis=-1, keepdims=True) * inv_n
    ex2 = jnp.sum(h * h, axis=-1, keepdims=True) * inv_n
    var = ex2 - mean * mean                              # one-pass biased var
    scale = packed[1:2, :] * lax.rsqrt(var + LN_EPS)     # gamma folded in
    h = h * scale + (packed[2:3, :] - mean * scale)      # == (h-mean)*scale+beta
    return jnp.maximum(h, 0.0)


def actor_kernel(fc1_true, fc2_true,
                 x_ref, w1_ref, p1_ref, w2_ref, p2_ref, w3_ref, b3_ref,
                 o_ref):
    # fc1 -> LayerNorm -> ReLU
    h = _linear_ln_relu(x_ref[...], w1_ref[...], p1_ref[...], fc1_true)
    # fc2 -> LayerNorm -> ReLU  (cast activations to weight dtype for bf16 MXU path)
    h = _linear_ln_relu(h.astype(w2_ref.dtype), w2_ref[...], p2_ref[...], fc2_true)
    # mu -> tanh
    a = jnp.dot(h.astype(w3_ref.dtype), w3_ref[...],
                preferred_element_type=jnp.float32) + b3_ref[...]
    o_ref[...] = jnp.tanh(a).astype(o_ref.dtype)


# --------------------------------------------------------------------------- #
# Wrapper
# --------------------------------------------------------------------------- #
@functools.partial(jax.jit, static_argnames=("block_b", "stream_dtype"))
def actor_forward(state, params, *, block_b=512, stream_dtype=jnp.float32):
    """Runs the actor MLP.  `stream_dtype` controls the storage/MXU-input dtype
    of the state and weight matrices (use jnp.bfloat16 on v6e/v7x to halve HBM
    traffic); LayerNorm/ReLU/tanh math and accumulation stay float32."""
    (w1, b1, g1, be1, w2, b2, g2, be2, w3, b3) = params
    B, d_in = state.shape
    fc1, fc2, n_act = w1.shape[1], w2.shape[1], w3.shape[1]

    # Lane-dense padded feature dims.
    d_pad = _round_up(d_in, _LANE)
    f1_pad = _round_up(fc1, _LANE)
    f2_pad = _round_up(fc2, _LANE)
    n_pad = _round_up(n_act, _LANE)

    # Batch tile: ~512 rows per grid step (bounded by the actual batch).
    tb = min(block_b, _round_up(B, _SUBLANE))
    b_pad = _round_up(B, tb)

    x = _pad2(state, b_pad, d_pad).astype(stream_dtype)
    w1p = _pad2(w1, d_pad, f1_pad).astype(stream_dtype)
    w2p = _pad2(w2, f1_pad, f2_pad).astype(stream_dtype)
    w3p = _pad2(w3, f2_pad, n_pad).astype(stream_dtype)
    # Packed (bias, gamma, beta) slabs, kept f32; padded lanes are exact zeros.
    p1 = jnp.concatenate([_pad2(b1, 1, f1_pad), _pad2(g1, 1, f1_pad),
                          _pad2(be1, 1, f1_pad)], axis=0).astype(jnp.float32)
    p2 = jnp.concatenate([_pad2(b2, 1, f2_pad), _pad2(g2, 1, f2_pad),
                          _pad2(be2, 1, f2_pad)], axis=0).astype(jnp.float32)
    b3p = _pad2(b3, 1, n_pad).astype(jnp.float32)

    grid = (b_pad // tb,)
    kernel = functools.partial(actor_kernel, fc1, fc2)

    out = pl.pallas_call(
        kernel,
        out_shape=jax.ShapeDtypeStruct((b_pad, n_pad), jnp.float32),
        grid_spec=pltpu.PrefetchScalarGridSpec(
            num_scalar_prefetch=0,
            grid=grid,
            in_specs=[
                pl.BlockSpec((tb, d_pad), lambda i: (i, 0)),       # state (streamed)
                pl.BlockSpec((d_pad, f1_pad), lambda i: (0, 0)),   # w1   (resident)
                pl.BlockSpec((3, f1_pad), lambda i: (0, 0)),       # b1/g1/be1
                pl.BlockSpec((f1_pad, f2_pad), lambda i: (0, 0)),  # w2
                pl.BlockSpec((3, f2_pad), lambda i: (0, 0)),       # b2/g2/be2
                pl.BlockSpec((f2_pad, n_pad), lambda i: (0, 0)),   # w3
                pl.BlockSpec((1, n_pad), lambda i: (0, 0)),        # b3
            ],
            out_specs=pl.BlockSpec((tb, n_pad), lambda i: (i, 0)),
        ),
        compiler_params=pltpu.CompilerParams(
            dimension_semantics=("parallel",),          # 2 TCs on v7x
            vmem_limit_bytes=64 * 1024 * 1024,          # safe on v7x's 64 MiB VMEM
        ),
    )(x, w1p, p1, w2p, p2, w3p, b3p)

    return out[:B, :n_act]


# --------------------------------------------------------------------------- #
# Init + pure-JAX reference
# --------------------------------------------------------------------------- #
def init_actor_params(key, input_dim, fc1_dims, fc2_dims, n_actions):
    """Mirrors ActorNetwork.__init__ init ranges (including its
    1/sqrt(out_features) quirk).  Weights stored transposed: (in, out)."""
    k = jax.random.split(key, 6)
    f1 = 1.0 / jnp.sqrt(jnp.float32(fc1_dims))
    f2 = 1.0 / jnp.sqrt(jnp.float32(fc2_dims))
    f3 = 0.003

    w1 = jax.random.uniform(k[0], (input_dim, fc1_dims), jnp.float32, -f1, f1)
    b1 = jax.random.uniform(k[1], (1, fc1_dims), jnp.float32, -f1, f1)
    g1 = jnp.ones((1, fc1_dims), jnp.float32)
    be1 = jnp.zeros((1, fc1_dims), jnp.float32)

    w2 = jax.random.uniform(k[2], (fc1_dims, fc2_dims), jnp.float32, -f2, f2)
    b2 = jax.random.uniform(k[3], (1, fc2_dims), jnp.float32, -f2, f2)
    g2 = jnp.ones((1, fc2_dims), jnp.float32)
    be2 = jnp.zeros((1, fc2_dims), jnp.float32)

    w3 = jax.random.uniform(k[4], (fc2_dims, n_actions), jnp.float32, -f3, f3)
    b3 = jax.random.uniform(k[5], (1, n_actions), jnp.float32, -f3, f3)

    return (w1, b1, g1, be1, w2, b2, g2, be2, w3, b3)


def _layernorm_ref(h, gamma, beta):
    mean = jnp.mean(h, axis=-1, keepdims=True)
    var = jnp.mean((h - mean) ** 2, axis=-1, keepdims=True)
    return (h - mean) * lax.rsqrt(var + LN_EPS) * gamma + beta


def actor_forward_ref(state, params):
    (w1, b1, g1, be1, w2, b2, g2, be2, w3, b3) = params
    h = state @ w1 + b1
    h = jnp.maximum(_layernorm_ref(h, g1, be1), 0.0)
    h = h @ w2 + b2
    h = jnp.maximum(_layernorm_ref(h, g2, be2), 0.0)
    return jnp.tanh(h @ w3 + b3)


# --------------------------------------------------------------------------- #
if __name__ == "__main__":
    key = jax.random.PRNGKey(0)
    k_param, k_state = jax.random.split(key)

    # Small shapes consistent with the module (state is a flat feature vector).
    B, D_IN, FC1, FC2, N_ACT = 8, 16, 64, 32, 4

    params = init_actor_params(k_param, D_IN, FC1, FC2, N_ACT)
    state = jax.random.normal(k_state, (B, D_IN), jnp.float32)

    ref = actor_forward_ref(state, params)

    # f32 path (exact-ish vs reference).
    out = jax.block_until_ready(actor_forward(state, params))
    assert out.shape == (B, N_ACT)
    assert jnp.allclose(out, ref, atol=1e-4, rtol=1e-4), "f32 mismatch vs reference"

    # bf16-streamed path (HBM-traffic optimization for v6e/v7x); f32 accumulation.
    out_bf16 = jax.block_until_ready(
        actor_forward(state, params, stream_dtype=jnp.bfloat16))
    assert out_bf16.shape == (B, N_ACT)
    assert jnp.allclose(out_bf16, ref, atol=5e-2, rtol=5e-2), "bf16 mismatch vs reference"

    print("KERNEL_OK")
</pallas_src>

<mosaic_0001>
module attributes {stable_mosaic.version = 11 : i64} {
  func.func @actor_kernel(%arg0: i32, %arg1: memref<8x128xf32, #tpu.memory_space<vmem>>, %arg2: memref<128x128xf32, #tpu.memory_space<vmem>>, %arg3: memref<3x128xf32, #tpu.memory_space<vmem>>, %arg4: memref<128x128xf32, #tpu.memory_space<vmem>>, %arg5: memref<3x128xf32, #tpu.memory_space<vmem>>, %arg6: memref<128x128xf32, #tpu.memory_space<vmem>>, %arg7: memref<1x128xf32, #tpu.memory_space<vmem>>, %arg8: memref<8x128xf32, #tpu.memory_space<vmem>>) attributes {dimension_semantics = [#tpu.dimension_semantics<parallel>], iteration_bounds = array<i64: 1>, scalar_prefetch = 0 : i64, scratch_operands = 0 : i64, tpu.core_type = #tpu.core_type<tc>, window_params = [{transform_indices = @transform_0, window_bounds = array<i64: 8, 128>}, {pipeline_mode = #tpu.pipeline_mode<synchronous>, transform_indices = @transform_1, window_bounds = array<i64: 128, 128>}, {pipeline_mode = #tpu.pipeline_mode<synchronous>, transform_indices = @transform_2, window_bounds = array<i64: 3, 128>}, {pipeline_mode = #tpu.pipeline_mode<synchronous>, transform_indices = @transform_3, window_bounds = array<i64: 128, 128>}, {pipeline_mode = #tpu.pipeline_mode<synchronous>, transform_indices = @transform_4, window_bounds = array<i64: 3, 128>}, {pipeline_mode = #tpu.pipeline_mode<synchronous>, transform_indices = @transform_5, window_bounds = array<i64: 128, 128>}, {pipeline_mode = #tpu.pipeline_mode<synchronous>, transform_indices = @transform_6, window_bounds = array<i64: 1, 128>}, {transform_indices = @transform_7, window_bounds = array<i64: 8, 128>}]} {
    %c0 = arith.constant 0 : index
    %c0_0 = arith.constant 0 : index
    %0 = vector.load %arg1[%c0, %c0_0] : memref<8x128xf32, #tpu.memory_space<vmem>>, vector<8x128xf32>
    %c0_1 = arith.constant 0 : index
    %c0_2 = arith.constant 0 : index
    %1 = vector.load %arg2[%c0_1, %c0_2] : memref<128x128xf32, #tpu.memory_space<vmem>>, vector<128x128xf32>
    %c0_3 = arith.constant 0 : index
    %c0_4 = arith.constant 0 : index
    %2 = vector.load %arg3[%c0_3, %c0_4] : memref<3x128xf32, #tpu.memory_space<vmem>>, vector<3x128xf32>
    %cst = arith.constant dense<0.000000e+00> : vector<8x128xf32>
    %3 = tpu.matmul %0, %1, %cst {dimension_numbers = #tpu.dot_dimension_numbers<[1], [0], [0], [1], [0, 0, 1, 1], [], []>} : vector<8x128xf32>, vector<128x128xf32>, vector<8x128xf32> -> vector<8x128xf32>
    %4 = vector.extract_strided_slice %2 {offsets = [0, 0], sizes = [1, 128], strides = [1, 1]} : vector<3x128xf32> to vector<1x128xf32>
    %5 = vector.broadcast %4 : vector<1x128xf32> to vector<8x128xf32>
    %6 = arith.addf %3, %5 : vector<8x128xf32>
    %cst_5 = arith.constant dense<0.000000e+00> : vector<8xf32>
    %7 = vector.multi_reduction <add>, %6, %cst_5 [1] : vector<8x128xf32> to vector<8xf32>
    %8 = vector.shape_cast %7 : vector<8xf32> to vector<8x1xf32>
    %cst_6 = arith.constant 1.562500e-02 : f32
    %9 = vector.broadcast %cst_6 : f32 to vector<8x1xf32>
    %10 = arith.mulf %8, %9 : vector<8x1xf32>
    %11 = arith.mulf %6, %6 : vector<8x128xf32>
    %cst_7 = arith.constant dense<0.000000e+00> : vector<8xf32>
    %12 = vector.multi_reduction <add>, %11, %cst_7 [1] : vector<8x128xf32> to vector<8xf32>
    %13 = vector.shape_cast %12 : vector<8xf32> to vector<8x1xf32>
    %cst_8 = arith.constant 1.562500e-02 : f32
    %14 = vector.broadcast %cst_8 : f32 to vector<8x1xf32>
    %15 = arith.mulf %13, %14 : vector<8x1xf32>
    %16 = arith.mulf %10, %10 : vector<8x1xf32>
    %17 = arith.subf %15, %16 : vector<8x1xf32>
    %18 = vector.extract_strided_slice %2 {offsets = [1, 0], sizes = [1, 128], strides = [1, 1]} : vector<3x128xf32> to vector<1x128xf32>
    %cst_9 = arith.constant 9.99999974E-6 : f32
    %19 = vector.broadcast %cst_9 : f32 to vector<8x1xf32>
    %20 = arith.addf %17, %19 : vector<8x1xf32>
    %21 = math.rsqrt %20 : vector<8x1xf32>
    %22 = vector.broadcast %18 : vector<1x128xf32> to vector<8x128xf32>
    %23 = vector.broadcast %21 : vector<8x1xf32> to vector<8x128xf32>
    %24 = arith.mulf %22, %23 : vector<8x128xf32>
    %25 = arith.mulf %6, %24 : vector<8x128xf32>
    %26 = vector.extract_strided_slice %2 {offsets = [2, 0], sizes = [1, 128], strides = [1, 1]} : vector<3x128xf32> to vector<1x128xf32>
    %27 = vector.broadcast %10 : vector<8x1xf32> to vector<8x128xf32>
    %28 = arith.mulf %27, %24 : vector<8x128xf32>
    %29 = vector.broadcast %26 : vector<1x128xf32> to vector<8x128xf32>
    %30 = arith.subf %29, %28 : vector<8x128xf32>
    %31 = arith.addf %25, %30 : vector<8x128xf32>
    %cst_10 = arith.constant 0.000000e+00 : f32
    %32 = vector.broadcast %cst_10 : f32 to vector<8x128xf32>
    %33 = arith.maximumf %31, %32 : vector<8x128xf32>
    %c0_11 = arith.constant 0 : index
    %c0_12 = arith.constant 0 : index
    %34 = vector.load %arg4[%c0_11, %c0_12] : memref<128x128xf32, #tpu.memory_space<vmem>>, vector<128x128xf32>
    %c0_13 = arith.constant 0 : index
    %c0_14 = arith.constant 0 : index
    %35 = vector.load %arg5[%c0_13, %c0_14] : memref<3x128xf32, #tpu.memory_space<vmem>>, vector<3x128xf32>
    %cst_15 = arith.constant dense<0.000000e+00> : vector<8x128xf32>
    %36 = tpu.matmul %33, %34, %cst_15 {dimension_numbers = #tpu.dot_dimension_numbers<[1], [0], [0], [1], [0, 0, 1, 1], [], []>} : vector<8x128xf32>, vector<128x128xf32>, vector<8x128xf32> -> vector<8x128xf32>
    %37 = vector.extract_strided_slice %35 {offsets = [0, 0], sizes = [1, 128], strides = [1, 1]} : vector<3x128xf32> to vector<1x128xf32>
    %38 = vector.broadcast %37 : vector<1x128xf32> to vector<8x128xf32>
    %39 = arith.addf %36, %38 : vector<8x128xf32>
    %cst_16 = arith.constant dense<0.000000e+00> : vector<8xf32>
    %40 = vector.multi_reduction <add>, %39, %cst_16 [1] : vector<8x128xf32> to vector<8xf32>
    %41 = vector.shape_cast %40 : vector<8xf32> to vector<8x1xf32>
    %cst_17 = arith.constant 3.125000e-02 : f32
    %42 = vector.broadcast %cst_17 : f32 to vector<8x1xf32>
    %43 = arith.mulf %41, %42 : vector<8x1xf32>
    %44 = arith.mulf %39, %39 : vector<8x128xf32>
    %cst_18 = arith.constant dense<0.000000e+00> : vector<8xf32>
    %45 = vector.multi_reduction <add>, %44, %cst_18 [1] : vector<8x128xf32> to vector<8xf32>
    %46 = vector.shape_cast %45 : vector<8xf32> to vector<8x1xf32>
    %cst_19 = arith.constant 3.125000e-02 : f32
    %47 = vector.broadcast %cst_19 : f32 to vector<8x1xf32>
    %48 = arith.mulf %46, %47 : vector<8x1xf32>
    %49 = arith.mulf %43, %43 : vector<8x1xf32>
    %50 = arith.subf %48, %49 : vector<8x1xf32>
    %51 = vector.extract_strided_slice %35 {offsets = [1, 0], sizes = [1, 128], strides = [1, 1]} : vector<3x128xf32> to vector<1x128xf32>
    %cst_20 = arith.constant 9.99999974E-6 : f32
    %52 = vector.broadcast %cst_20 : f32 to vector<8x1xf32>
    %53 = arith.addf %50, %52 : vector<8x1xf32>
    %54 = math.rsqrt %53 : vector<8x1xf32>
    %55 = vector.broadcast %51 : vector<1x128xf32> to vector<8x128xf32>
    %56 = vector.broadcast %54 : vector<8x1xf32> to vector<8x128xf32>
    %57 = arith.mulf %55, %56 : vector<8x128xf32>
    %58 = arith.mulf %39, %57 : vector<8x128xf32>
    %59 = vector.extract_strided_slice %35 {offsets = [2, 0], sizes = [1, 128], strides = [1, 1]} : vector<3x128xf32> to vector<1x128xf32>
    %60 = vector.broadcast %43 : vector<8x1xf32> to vector<8x128xf32>
    %61 = arith.mulf %60, %57 : vector<8x128xf32>
    %62 = vector.broadcast %59 : vector<1x128xf32> to vector<8x128xf32>
    %63 = arith.subf %62, %61 : vector<8x128xf32>
    %64 = arith.addf %58, %63 : vector<8x128xf32>
    %cst_21 = arith.constant 0.000000e+00 : f32
    %65 = vector.broadcast %cst_21 : f32 to vector<8x128xf32>
    %66 = arith.maximumf %64, %65 : vector<8x128xf32>
    %c0_22 = arith.constant 0 : index
    %c0_23 = arith.constant 0 : index
    %67 = vector.load %arg6[%c0_22, %c0_23] : memref<128x128xf32, #tpu.memory_space<vmem>>, vector<128x128xf32>
    %cst_24 = arith.constant dense<0.000000e+00> : vector<8x128xf32>
    %68 = tpu.matmul %66, %67, %cst_24 {dimension_numbers = #tpu.dot_dimension_numbers<[1], [0], [0], [1], [0, 0, 1, 1], [], []>} : vector<8x128xf32>, vector<128x128xf32>, vector<8x128xf32> -> vector<8x128xf32>
    %c0_25 = arith.constant 0 : index
    %c0_26 = arith.constant 0 : index
    %69 = vector.load %arg7[%c0_25, %c0_26] : memref<1x128xf32, #tpu.memory_space<vmem>>, vector<1x128xf32>
    %70 = vector.broadcast %69 : vector<1x128xf32> to vector<8x128xf32>
    %71 = arith.addf %68, %70 : vector<8x128xf32>
    %72 = math.tanh %71 : vector<8x128xf32>
    %c0_27 = arith.constant 0 : index
    %c0_28 = arith.constant 0 : index
    %73 = vector.load %arg8[%c0_27, %c0_28] : memref<8x128xf32, #tpu.memory_space<vmem>>, vector<8x128xf32>
    tpu.vector_store %arg8[%c0_27, %c0_28], %72 {strides = array<i32>} : memref<8x128xf32, #tpu.memory_space<vmem>>, vector<8x128xf32>,
    return
  }
  func.func @transform_0(%arg0: i32) -> (i32, i32) {
    %c0_i32 = arith.constant 0 : i32
    %c0_i32_0 = arith.constant 0 : i32
    return %arg0, %c0_i32 : i32, i32
  }
  func.func @transform_1(%arg0: i32) -> (i32, i32) {
    %c0_i32 = arith.constant 0 : i32
    %c0_i32_0 = arith.constant 0 : i32
    %c0_i32_1 = arith.constant 0 : i32
    return %c0_i32, %c0_i32_0 : i32, i32
  }
  func.func @transform_2(%arg0: i32) -> (i32, i32) {
    %c0_i32 = arith.constant 0 : i32
    %c0_i32_0 = arith.constant 0 : i32
    %c0_i32_1 = arith.constant 0 : i32
    return %c0_i32, %c0_i32_0 : i32, i32
  }
  func.func @transform_3(%arg0: i32) -> (i32, i32) {
    %c0_i32 = arith.constant 0 : i32
    %c0_i32_0 = arith.constant 0 : i32
    %c0_i32_1 = arith.constant 0 : i32
    return %c0_i32, %c0_i32_0 : i32, i32
  }
  func.func @transform_4(%arg0: i32) -> (i32, i32) {
    %c0_i32 = arith.constant 0 : i32
    %c0_i32_0 = arith.constant 0 : i32
    %c0_i32_1 = arith.constant 0 : i32
    return %c0_i32, %c0_i32_0 : i32, i32
  }
  func.func @transform_5(%arg0: i32) -> (i32, i32) {
    %c0_i32 = arith.constant 0 : i32
    %c0_i32_0 = arith.constant 0 : i32
    %c0_i32_1 = arith.constant 0 : i32
    return %c0_i32, %c0_i32_0 : i32, i32
  }
  func.func @transform_6(%arg0: i32) -> (i32, i32) {
    %c0_i32 = arith.constant 0 : i32
    %c0_i32_0 = arith.constant 0 : i32
    %c0_i32_1 = arith.constant 0 : i32
    return %c0_i32, %c0_i32_0 : i32, i32
  }
  func.func @transform_7(%arg0: i32) -> (i32, i32) {
    %c0_i32 = arith.constant 0 : i32
    %c0_i32_0 = arith.constant 0 : i32
    return %arg0, %c0_i32 : i32, i32
  }
}

</mosaic_0001>

<bundles_post_ra>
// kernel: actor_forward.1
= control target key start
LH: loop header
LB: loop body
LE: loop exit
PB: predicated region body
PF: predicated region fallthrough
CT: control target
= control target key end

     0   :  { %12 = vsyncpa [#allocation3], 0  ;;  %s1096_s0 = inlined_call_operand.hbm [shape: f32[8,128], index: 0, kind: input, shape index: {}]   ;;  %s1097_s1 = inlined_call_operand.hbm [shape: f32[128,128], index: 1, kind: input, shape index: {}]   ;;  %s1098_s2 = inlined_call_operand.hbm [shape: f32[3,128], index: 2, kind: input, shape index: {}]   ;;  %s1099_s3 = inlined_call_operand.hbm [shape: f32[128,128], index: 3, kind: input, shape index: {}]   ;;  %s1100_s4 = inlined_call_operand.hbm [shape: f32[3,128], index: 4, kind: input, shape index: {}]   ;;  %s1101_s5 = inlined_call_operand.hbm [shape: f32[128,128], index: 5, kind: input, shape index: {}]   ;;  %s1102_s6 = inlined_call_operand.hbm [shape: f32[1,128], index: 6, kind: input, shape index: {}]   ;;  %s1103_s7 = inlined_call_operand.hbm [shape: f32[8,128], index: 7, kind: output, shape index: {}]  }
   0x1   :  { %13 = vsyncpa [#allocation6], 0 }
   0x2   :  { %14 = vsyncpa [#allocation9], 0 }
   0x3   :  { %15 = vsyncpa [#allocation12], 0 }
   0x4   :  { %16 = vsyncpa [#allocation4], 0  ;;  %s894_s24 = smov [#allocation5]   ;;  %s708_s28 = scalar_lea.hbm %s1097_s1, 2048 }
   0x5   :  { %s32_s25 = sshll.u32 %s894_s24, 4  ;;  %p709_p0 = scmp.ne.s32.totalorder %s1097_s1, %s708_s28  ;;  %s33_s25 = int_to_ptr.vmem [resolvable:$true] %s32_s25 }
   0x6   :  { %p712_p1 = scmp.lt.u32.totalorder %s708_s28, %s1097_s1 }
   0x8   :  { %p714_p2 = pnand %p712_p1, %p709_p0 }
   0xa   :  { %717 = shalt.err (!%p714_p2)
}
   0xb   :  { %s718_s10 = scalar_lea.vmem %s33_s25, 2048  ;;  %p723_p4 = scmp.lt.s32.totalorder %s33_s25, %s33_s25 }
   0xc   :  { %p719_p3 = scmp.ne.s32.totalorder %s33_s25, %s718_s10  ;;  %p724_p5 = scmp.lt.s32.totalorder %s718_s10, %s718_s10 }
   0xe   :  { %p725_p6 = por %p724_p5, %p723_p4 }
  0x10   :  { %p726_p7 = pnand %p725_p6, %p719_p3 }
  0x12   :  { %729 = shalt.err (!%p726_p7)
}
  0x13   :  { %s895_s11 = smov 128   ;;  %s896_s12 = smov 8  }
  0x14   :  { %38 = dma.hbm_to_vmem [thread:$0]  %s1097_s1, 2048, %s33_s25, [#allocation6], %s895_s11, %s895_s11, %s896_s12  }
  0x15   :  { %s897_s15 = smov [#allocation8]   ;;  %s898_s17 = smov [#allocation11]  }
  0x16   :  { %s54_s16 = sshll.u32 %s897_s15, 4  ;;  %s76_s18 = sshll.u32 %s898_s17, 4  ;;  %s55_s16 = int_to_ptr.vmem [resolvable:$true] %s54_s16  ;;  %s77_s18 = int_to_ptr.vmem [resolvable:$true] %s76_s18 }
  0x17   :  { %s730_s21 = scalar_lea.hbm %s1099_s3, 2048 }
  0x18   :  { %p731_p8 = scmp.ne.s32.totalorder %s1099_s3, %s730_s21  ;;  %p734_p9 = scmp.lt.u32.totalorder %s730_s21, %s1099_s3 }
  0x1a   :  { %p736_p10 = pnand %p734_p9, %p731_p8 }
  0x1c   :  { %739 = shalt.err (!%p736_p10)
}
  0x1d   :  { %s740_s1 = scalar_lea.vmem %s55_s16, 2048  ;;  %p745_p12 = scmp.lt.s32.totalorder %s55_s16, %s55_s16 }
  0x1e   :  { %p741_p11 = scmp.ne.s32.totalorder %s55_s16, %s740_s1  ;;  %p746_p13 = scmp.lt.s32.totalorder %s740_s1, %s740_s1 }
  0x20   :  { %p747_p0 = por %p746_p13, %p745_p12 }
  0x22   :  { %p748_p1 = pnand %p747_p0, %p741_p11 }
  0x24   :  { %751 = shalt.err (!%p748_p1)
}
  0x25   :  { %60 = dma.hbm_to_vmem [thread:$0]  %s1099_s3, 2048, %s55_s16, [#allocation9], %s895_s11, %s895_s11, %s896_s12  }
  0x26   :  { %s752_s30 = scalar_lea.hbm %s1101_s5, 2048 }
  0x27   :  { %p753_p2 = scmp.ne.s32.totalorder %s1101_s5, %s752_s30  ;;  %p756_p3 = scmp.lt.u32.totalorder %s752_s30, %s1101_s5 }
  0x29   :  { %p758_p4 = pnand %p756_p3, %p753_p2 }
  0x2b   :  { %761 = shalt.err (!%p758_p4)
}
  0x2c   :  { %s762_s14 = scalar_lea.vmem %s77_s18, 2048  ;;  %p767_p6 = scmp.lt.s32.totalorder %s77_s18, %s77_s18 }
  0x2d   :  { %p763_p5 = scmp.ne.s32.totalorder %s77_s18, %s762_s14  ;;  %p768_p7 = scmp.lt.s32.totalorder %s762_s14, %s762_s14 }
  0x2f   :  { %p769_p8 = por %p768_p7, %p767_p6 }
  0x31   :  { %p770_p9 = pnand %p769_p8, %p763_p5 }
  0x33   :  { %773 = shalt.err (!%p770_p9)
}
  0x34   :  { %82 = dma.hbm_to_vmem [thread:$0]  %s1101_s5, 2048, %s77_s18, [#allocation12], %s895_s11, %s895_s11, %s896_s12  }
  0x35   :  { %s899_s16 = smov [#allocation2]   ;;  %s900_s19 = smov [#allocation7]  }
  0x36   :  { %s23_s17 = sshll.u32 %s899_s16, 4  ;;  %s45_s20 = sshll.u32 %s900_s19, 4  ;;  %s24_s17 = int_to_ptr.vmem [resolvable:$true] %s23_s17  ;;  %s46_s20 = int_to_ptr.vmem [resolvable:$true] %s45_s20 }
  0x37   :  { %s774_s23 = scalar_lea.hbm %s1096_s0, 128 }
  0x38   :  { %p775_p10 = scmp.ne.s32.totalorder %s1096_s0, %s774_s23  ;;  %p778_p11 = scmp.lt.u32.totalorder %s774_s23, %s1096_s0 }
  0x3a   :  { %p780_p12 = pnand %p778_p11, %p775_p10 }
  0x3c   :  { %783 = shalt.err (!%p780_p12)
}
  0x3d   :  { %s784_s5 = scalar_lea.vmem %s24_s17, 128  ;;  %p789_p0 = scmp.lt.s32.totalorder %s24_s17, %s24_s17 }
  0x3e   :  { %p785_p13 = scmp.ne.s32.totalorder %s24_s17, %s784_s5  ;;  %p790_p1 = scmp.lt.s32.totalorder %s784_s5, %s784_s5 }
  0x40   :  { %p791_p2 = por %p790_p1, %p789_p0 }
  0x42   :  { %p792_p3 = pnand %p791_p2, %p785_p13 }
  0x44   :  { %795 = shalt.err (!%p792_p3)
}
  0x45   :  { %26 = dma.hbm_to_vmem [thread:$0]  %s1096_s0, 128, %s24_s17, [#allocation3]  }
  0x46   :  { %s796_s28 = scalar_lea.hbm %s1098_s2, 64 }
  0x47   :  { %p797_p4 = scmp.ne.s32.totalorder %s1098_s2, %s796_s28  ;;  %p800_p5 = scmp.lt.u32.totalorder %s796_s28, %s1098_s2 }
  0x49   :  { %p802_p6 = pnand %p800_p5, %p797_p4 }
  0x4b   :  { %805 = shalt.err (!%p802_p6)
}
  0x4c   :  { %s806_s10 = scalar_lea.vmem %s46_s20, 64  ;;  %p811_p8 = scmp.lt.s32.totalorder %s46_s20, %s46_s20 }
  0x4d   :  { %p807_p7 = scmp.ne.s32.totalorder %s46_s20, %s806_s10  ;;  %p812_p9 = scmp.lt.s32.totalorder %s806_s10, %s806_s10 }
  0x4f   :  { %p813_p10 = por %p812_p9, %p811_p8 }
  0x51   :  { %p814_p11 = pnand %p813_p10, %p807_p7 }
  0x53   :  { %817 = shalt.err (!%p814_p11)
}
  0x54   :  { %48 = dma.hbm_to_vmem [thread:$0]  %s1098_s2, 64, %s46_s20, [#allocation6]  }
  0x55   :  { %s901_s14 = smov [#allocation10]   ;;  %s902_s15 = smov [#allocation13]  }
  0x56   :  { %s67_s3 = sshll.u32 %s901_s14, 4  ;;  %s89_s16 = sshll.u32 %s902_s15, 4  ;;  %s68_s3 = int_to_ptr.vmem [resolvable:$true] %s67_s3  ;;  %s90_s16 = int_to_ptr.vmem [resolvable:$true] %s89_s16 }
  0x57   :  { %s818_s21 = scalar_lea.hbm %s1100_s4, 64 }
  0x58   :  { %p819_p12 = scmp.ne.s32.totalorder %s1100_s4, %s818_s21  ;;  %p822_p13 = scmp.lt.u32.totalorder %s818_s21, %s1100_s4 }
  0x5a   :  { %p824_p0 = pnand %p822_p13, %p819_p12 }
  0x5c   :  { %827 = shalt.err (!%p824_p0)
}
  0x5d   :  { %s828_s2 = scalar_lea.vmem %s68_s3, 64  ;;  %p833_p2 = scmp.lt.s32.totalorder %s68_s3, %s68_s3 }
  0x5e   :  { %p829_p1 = scmp.ne.s32.totalorder %s68_s3, %s828_s2  ;;  %p834_p3 = scmp.lt.s32.totalorder %s828_s2, %s828_s2 }
  0x60   :  { %p835_p4 = por %p834_p3, %p833_p2 }
  0x62   :  { %p836_p5 = pnand %p835_p4, %p829_p1 }
  0x64   :  { %839 = shalt.err (!%p836_p5)
}
  0x65   :  { %70 = dma.hbm_to_vmem [thread:$0]  %s1100_s4, 64, %s68_s3, [#allocation9]  }
  0x66   :  { %s840_s11 = scalar_lea.hbm %s1102_s6, 16 }
  0x67   :  { %p841_p6 = scmp.ne.s32.totalorder %s1102_s6, %s840_s11  ;;  %p844_p7 = scmp.lt.u32.totalorder %s840_s11, %s1102_s6 }
  0x69   :  { %p846_p8 = pnand %p844_p7, %p841_p6 }
  0x6b   :  { %849 = shalt.err (!%p846_p8)
}
  0x6c   :  { %s850_s29 = scalar_lea.vmem %s90_s16, 16  ;;  %s854_s30 = scalar_lea.vmem %s90_s16, 32 }
  0x6d   :  { %p851_p9 = scmp.ne.s32.totalorder %s90_s16, %s850_s29  ;;  %p855_p10 = scmp.lt.s32.totalorder %s90_s16, %s90_s16 }
  0x6e   :  { %p856_p11 = scmp.lt.s32.totalorder %s854_s30, %s850_s29 }
  0x70   :  { %p857_p12 = por %p856_p11, %p855_p10 }
  0x72   :  { %p858_p13 = pnand %p857_p12, %p851_p9 }
  0x74   :  { %861 = shalt.err (!%p858_p13)
}
  0x75   :  { %92 = dma.hbm_to_vmem [thread:$0]  %s1102_s6, 16, %s90_s16, [#allocation12]  }
  0x76   :  { %884 = dma.done.wait [#allocation3], 128  }
  0x77   :  { %885 = vsyncadd [#allocation3], 4294967168 }
  0x78   :  { %886 = dma.done.wait [#allocation6], 2112  }
  0x79   :  { %887 = vsyncadd [#allocation6], 4294965184 }
  0x7a   :  { %888 = dma.done.wait [#allocation9], 2112  }
  0x7b   :  { %889 = vsyncadd [#allocation9], 4294965184 }
  0x7c   :  { %890 = dma.done.wait [#allocation12], 2064  }
  0x7d   :  { %891 = vsyncadd [#allocation12], 4294965232  ;;  %v903_v0 = vmov 0.0|0.0   ;;  %vm904_vm0 = vmmov 0   ;;  %v905_v1 = vmov 0.0   ;;  %v115_v2 = vld [vmem:[#allocation5] sm:$0xff]  ;;  %v132_v27 = vlaneseq }
  0x7e   :  { %617 = vmatprep.subr.bf16.mxu0 %v903_v0  ;;  %544 = vmatprep.mubr.msk.f32.mxu0 %vm904_vm0, %v905_v1  ;;  %v116_v3 = vld [vmem:[#allocation5 + $0x8] sm:$0xff]  ;;  %v117_v4 = vld [vmem:[#allocation5 + $0x10] sm:$0xff]  ;;  %v118_v6 = vld [vmem:[#allocation5 + $0x18] sm:$0xff]  ;;  %s906_s6 = smov [#allocation14]  }
  0x7f   :  { %641 = vmatprep.subr.bf16.mxu1 %v903_v0  ;;  %579 = vmatprep.mubr.msk.f32.mxu1 %vm904_vm0, %v905_v1  ;;  %v618_v5 = vpack.c.bf16 %v116_v3, %v115_v2  ;;  %v621_v7 = vpack.c.bf16 %v118_v6, %v117_v4  ;;  %v119_v8 = vld [vmem:[#allocation5 + $0x20] sm:$0xff]  ;;  %v120_v9 = vld [vmem:[#allocation5 + $0x28] sm:$0xff]  ;;  %v121_v11 = vld [vmem:[#allocation5 + $0x30] sm:$0xff]  ;;  %v1053_v28 = vshrl.u32 %v132_v27, 7  ;;  %s448_s9 = sshll.u32 %s906_s6, 4  ;;  %s449_s9 = int_to_ptr.vmem [resolvable:$true] %s448_s9 }
  0x80   :  { %v624_v10 = vpack.c.bf16 %v120_v9, %v119_v8  ;;  %v122_v12 = vld [vmem:[#allocation5 + $0x38] sm:$0xff]  ;;  %v123_v14 = vld [vmem:[#allocation5 + $0x40] sm:$0xff]  ;;  %v124_v15 = vld [vmem:[#allocation5 + $0x48] sm:$0xff]  ;;  %s862_s10 = scalar_lea.vmem %s449_s9, 128  ;;  %p867_p1 = scmp.lt.s32.totalorder %s449_s9, %s449_s9 }
  0x81   :  { %619 = vmatpush3.bf16.msra.mxu0 %v618_v5  ;;  %v627_v13 = vpack.c.bf16 %v122_v12, %v121_v11  ;;  %v630_v16 = vpack.c.bf16 %v124_v15, %v123_v14  ;;  %v125_v17 = vld [vmem:[#allocation5 + $0x50] sm:$0xff]  ;;  %v126_v18 = vld [vmem:[#allocation5 + $0x58] sm:$0xff]  ;;  %v127_v20 = vld [vmem:[#allocation5 + $0x60] sm:$0xff]  ;;  %v134_v29 = vsub.s32 0, %v1053_v28  ;;  %v219_v4 = vsub.s32 1, %v1053_v28  ;;  %p863_p0 = scmp.ne.s32.totalorder %s449_s9, %s862_s10  ;;  %p868_p2 = scmp.lt.s32.totalorder %s862_s10, %s862_s10 }
  0x82   :  { %620 = vmatprep.subr.bf16.mxu0 %v903_v0  ;;  %v633_v19 = vpack.c.bf16 %v126_v18, %v125_v17  ;;  %v128_v21 = vld [vmem:[#allocation5 + $0x68] sm:$0xff]  ;;  %v129_v23 = vld [vmem:[#allocation5 + $0x70] sm:$0xff]  ;;  %v130_v24 = vld [vmem:[#allocation5 + $0x78] sm:$0xff]  ;;  %v226_v6 = vsub.s32 2, %v1053_v28 }
  0x83   :  { %v636_v22 = vpack.c.bf16 %v128_v21, %v127_v20  ;;  %v639_v25 = vpack.c.bf16 %v130_v24, %v129_v23  ;;  %v114_v26 = vld [vmem:[#allocation2] sm:$0xff]  ;;  %v131_v30 = vld [vmem:[#allocation7] sm:$0x7]  ;;  %v231_v36 = vld [vmem:[#allocation8] sm:$0xff]  ;;  %p869_p3 = por %p868_p2, %p867_p1 }
  0x84   :  { %v135_v31 = vrot.slane %v131_v30, %v134_v29  ;;  %v232_v37 = vld [vmem:[#allocation8 + $0x8] sm:$0xff]  ;;  %v233_v39 = vld [vmem:[#allocation8 + $0x10] sm:$0xff]  ;;  %v234_v40 = vld [vmem:[#allocation8 + $0x18] sm:$0xff]  ;;  %v220_v5 = vrot.slane %v131_v30, %v219_v4  ;;  %v227_v8 = vrot.slane %v131_v30, %v226_v6 }
  0x85   :  { %622 = vmatpush3.bf16.msra.mxu0 %v621_v7  ;;  %v642_v38 = vpack.c.bf16 %v232_v37, %v231_v36  ;;  %v645_v41 = vpack.c.bf16 %v234_v40, %v233_v39  ;;  %v235_v42 = vld [vmem:[#allocation8 + $0x20] sm:$0xff]  ;;  %v236_v43 = vld [vmem:[#allocation8 + $0x28] sm:$0xff]  ;;  %v237_v45 = vld [vmem:[#allocation8 + $0x30] sm:$0xff]  ;;  %p870_p4 = pnand %p869_p3, %p863_p0 }
  0x86   :  { %623 = vmatprep.subr.bf16.mxu0 %v903_v0  ;;  %v648_v44 = vpack.c.bf16 %v236_v43, %v235_v42  ;;  %v238_v46 = vld [vmem:[#allocation8 + $0x38] sm:$0xff]  ;;  %v239_v48 = vld [vmem:[#allocation8 + $0x40] sm:$0xff]  ;;  %v240_v49 = vld [vmem:[#allocation8 + $0x48] sm:$0xff] }
  0x87   :  { %643 = vmatpush3.bf16.msra.mxu1 %v642_v38  ;;  %v651_v47 = vpack.c.bf16 %v238_v46, %v237_v45  ;;  %v654_v50 = vpack.c.bf16 %v240_v49, %v239_v48  ;;  %v241_v51 = vld [vmem:[#allocation8 + $0x50] sm:$0xff]  ;;  %v242_v52 = vld [vmem:[#allocation8 + $0x58] sm:$0xff]  ;;  %v243_v54 = vld [vmem:[#allocation8 + $0x60] sm:$0xff] }
  0x88   :  { %644 = vmatprep.subr.bf16.mxu1 %v903_v0  ;;  %v657_v53 = vpack.c.bf16 %v242_v52, %v241_v51  ;;  %v244_v55 = vld [vmem:[#allocation8 + $0x68] sm:$0xff]  ;;  %v245_v57 = vld [vmem:[#allocation8 + $0x70] sm:$0xff]  ;;  %v246_v58 = vld [vmem:[#allocation8 + $0x78] sm:$0xff] }
  0x89   :  { %625 = vmatpush3.bf16.msra.mxu0 %v624_v10  ;;  %v660_v56 = vpack.c.bf16 %v244_v55, %v243_v54  ;;  %v663_v59 = vpack.c.bf16 %v246_v58, %v245_v57  ;;  %v247_v15 = vld [vmem:[#allocation10] sm:$0x7]  ;;  %v347_v21 = vld [vmem:[#allocation11] sm:$0xff]  ;;  %v349_v24 = vld [vmem:[#allocation11 + $0x10] sm:$0xff] }
  0x8a   :  { %626 = vmatprep.subr.bf16.mxu0 %v903_v0  ;;  %v351_v27 = vld [vmem:[#allocation11 + $0x20] sm:$0xff]  ;;  %v357_v37 = vld [vmem:[#allocation11 + $0x50] sm:$0xff]  ;;  %v358_v38 = vld [vmem:[#allocation11 + $0x58] sm:$0xff]  ;;  %v343_v55 = vrot.slane %v247_v15, %v226_v6 }
  0x8b   :  { %646 = vmatpush3.bf16.msra.mxu1 %v645_v41  ;;  %v681_v39 = vpack.c.bf16 %v358_v38, %v357_v37  ;;  %v359_v40 = vld [vmem:[#allocation11 + $0x60] sm:$0xff]  ;;  %v360_v41 = vld [vmem:[#allocation11 + $0x68] sm:$0xff]  ;;  %v361_v43 = vld [vmem:[#allocation11 + $0x70] sm:$0xff] }
  0x8c   :  { %647 = vmatprep.subr.bf16.mxu1 %v903_v0  ;;  %v684_v42 = vpack.c.bf16 %v360_v41, %v359_v40 }
  0x8d   :  { %628 = vmatpush3.bf16.msra.mxu0 %v627_v13 }
  0x8e   :  { %629 = vmatprep.subr.bf16.mxu0 %v903_v0 }
  0x8f   :  { %649 = vmatpush3.bf16.msra.mxu1 %v648_v44  ;;  %v362_v44 = vld [vmem:[#allocation11 + $0x78] sm:$0xff] }
  0x90   :  { %650 = vmatprep.subr.bf16.mxu1 %v903_v0  ;;  %v687_v45 = vpack.c.bf16 %v362_v44, %v361_v43 }
  0x91   :  { %631 = vmatpush3.bf16.msra.mxu0 %v630_v16  ;;  %v251_v16 = vrot.slane %v247_v15, %v134_v29  ;;  %v352_v29 = vld [vmem:[#allocation11 + $0x28] sm:$0xff] }
  0x92   :  { %632 = vmatprep.subr.bf16.mxu0 %v903_v0  ;;  %v672_v30 = vpack.c.bf16 %v352_v29, %v351_v27 }
  0x93   :  { %652 = vmatpush3.bf16.msra.mxu1 %v651_v47 }
  0x94   :  { %653 = vmatprep.subr.bf16.mxu1 %v903_v0 }
  0x95   :  { %634 = vmatpush3.bf16.msra.mxu0 %v633_v19 }
  0x96   :  { %635 = vmatprep.subr.bf16.mxu0 %v903_v0 }
  0x97   :  { %655 = vmatpush3.bf16.msra.mxu1 %v654_v50 }
  0x98   :  { %656 = vmatprep.subr.bf16.mxu1 %v903_v0 }
  0x99   :  { %637 = vmatpush3.bf16.msra.mxu0 %v636_v22  ;;  %v348_v22 = vld [vmem:[#allocation11 + $0x8] sm:$0xff] }
  0x9a   :  { %638 = vmatprep.subr.bf16.mxu0 %v903_v0  ;;  %v666_v23 = vpack.c.bf16 %v348_v22, %v347_v21 }
  0x9b   :  { %658 = vmatpush3.bf16.msra.mxu1 %v657_v53  ;;  %v336_v53 = vrot.slane %v247_v15, %v219_v4 }
  0x9c   :  { %659 = vmatprep.subr.bf16.mxu1 %v903_v0 }
  0x9d   :  { %640 = vmatpush3.bf16.msra.mxu0 %v639_v25  ;;  %v350_v25 = vld [vmem:[#allocation11 + $0x18] sm:$0xff] }
  0x9e   :  { %665 = vmatprep.subr.bf16.mxu0 %v903_v0 }
  0x9f   :  { %661 = vmatpush3.bf16.msra.mxu1 %v660_v56 }
  0xa0   :  { %545 = vmatmul.mubr.f32.vlgmr.msra.gmra.mrb[0].mxu0 %v114_v26  ;;  %662 = vmatprep.subr.bf16.mxu1 %v903_v0  ;;  %v669_v26 = vpack.c.bf16 %v350_v25, %v349_v24 }
  0xa1   :  { %614 = vmatprep.mubr.msk.f32.mxu0 %vm904_vm0, %v905_v1  ;;  %667 = vmatpush3.bf16.msra.mxu0 %v666_v23 }
  0xa2   :  { %668 = vmatprep.subr.bf16.mxu0 %v903_v0 }
  0xa3   :  { %664 = vmatpush3.bf16.msra.mxu1 %v663_v59 }
  0xa5   :  { %670 = vmatpush3.bf16.msra.mxu0 %v669_v26 }
  0xa6   :  { %671 = vmatprep.subr.bf16.mxu0 %v903_v0 }
  0xa9   :  { %673 = vmatpush3.bf16.msra.mxu0 %v672_v30 }
  0xaa   :  { %674 = vmatprep.subr.bf16.mxu0 %v903_v0 }
 0x173   :  { %v202_v32 = vpop.f32.mrb[0].mxu0 }
 0x174   :  { %v203_v33 = vadd.f32 %v202_v32, %v135_v31  ;;  %v546_v34 = vpop.f32.mrb[1].mxu0  ;;  %v353_v31 = vld [vmem:[#allocation11 + $0x30] sm:$0xff]  ;;  %v354_v32 = vld [vmem:[#allocation11 + $0x38] sm:$0xff] }
 0x175   :  { %v355_v34 = vld [vmem:[#allocation11 + $0x40] sm:$0xff] }
 0x176   :  { %206 = vadd.xlane.f32.xlu0 %v203_v33  ;;  %v209_v35 = vmul.f32 %v203_v33, %v203_v33 }
 0x17a   :  { %210 = vadd.xlane.f32.xlu0 %v209_v35  ;;  %v356_v35 = vld [vmem:[#allocation11 + $0x48] sm:$0xff] }
 0x17b   :  { %v678_v36 = vpack.c.bf16 %v356_v35, %v355_v34 }
 0x203   :  { %v207_v60 = vpop.xlane.xlu0 %206 }
 0x204   :  { %v208_v61 = vmul.f32 0.015625, %v207_v60 }
 0x206   :  { %v213_v63 = vmul.f32 %v208_v61, %v208_v61 }
 0x207   :  { %v211_v62 = vpop.xlane.xlu0 %210 }
 0x208   :  { %v212_v1 = vmul.f32 0.015625, %v211_v62 }
 0x20a   :  { %v214_v2 = vsub.f32 %v212_v1, %v213_v63 }
 0x20c   :  { %v215_v3 = vadd.f32 1e-05, %v214_v2 }
 0x20e   :  { %702 = vrsqrt.f32 %v215_v3 }
 0x218   :  { %v703_v7 = vpop.eup %702 }
 0x219   :  { %v221_v9 = vmul.f32 %v703_v7, %v220_v5 }
 0x21b   :  { %v223_v10 = vmul.f32 %v221_v9, %v208_v61  ;;  %v222_v11 = vmul.f32 %v221_v9, %v203_v33  ;;  %v675_v33 = vpack.c.bf16 %v354_v32, %v353_v31  ;;  %v460_v61 = vld [vmem:[#allocation13] ss:$0 sm:$0xff] }
 0x21d   :  { %v228_v12 = vsub.f32 %v227_v8, %v223_v10  ;;  %676 = vmatpush3.bf16.msra.mxu0 %v675_v33 }
 0x21e   :  { %677 = vmatprep.subr.bf16.mxu0 %v903_v0 }
 0x21f   :  { %v229_v13 = vadd.f32 %v228_v12, %v222_v11 }
 0x221   :  { %v230_v14 = vmax.f32 %v229_v13, 0.0  ;;  %679 = vmatpush3.bf16.msra.mxu0 %v678_v36 }
 0x222   :  { %680 = vmatprep.subr.bf16.mxu0 %v903_v0 }
 0x223   :  { %580 = vmatmul.mubr.f32.vlgmr.msra.gmra.mrb[0].mxu1 %v230_v14 }
 0x225   :  { %682 = vmatpush3.bf16.msra.mxu0 %v681_v39 }
 0x226   :  { %683 = vmatprep.subr.bf16.mxu0 %v903_v0 }
 0x229   :  { %685 = vmatpush3.bf16.msra.mxu0 %v684_v42 }
 0x22a   :  { %686 = vmatprep.subr.bf16.mxu0 %v903_v0 }
 0x22d   :  { %688 = vmatpush3.bf16.msra.mxu0 %v687_v45 }
 0x2f6   :  { %v318_v17 = vpop.f32.mrb[0].mxu1 }
 0x2f7   :  { %v319_v18 = vadd.f32 %v318_v17, %v251_v16  ;;  %v581_v19 = vpop.f32.mrb[1].mxu1 }
 0x2f9   :  { %322 = vadd.xlane.f32.xlu1 %v319_v18  ;;  %v325_v20 = vmul.f32 %v319_v18, %v319_v18 }
 0x2fd   :  { %326 = vadd.xlane.f32.xlu1 %v325_v20 }
 0x386   :  { %v323_v46 = vpop.xlane.xlu1 %322 }
 0x387   :  { %v324_v47 = vmul.f32 0.03125, %v323_v46 }
 0x389   :  { %v329_v49 = vmul.f32 %v324_v47, %v324_v47 }
 0x38a   :  { %v327_v48 = vpop.xlane.xlu1 %326 }
 0x38b   :  { %v328_v50 = vmul.f32 0.03125, %v327_v48 }
 0x38d   :  { %v330_v51 = vsub.f32 %v328_v50, %v329_v49 }
 0x38f   :  { %v331_v52 = vadd.f32 1e-05, %v330_v51 }
 0x391   :  { %704 = vrsqrt.f32 %v331_v52 }
 0x39b   :  { %v705_v54 = vpop.eup %704 }
 0x39c   :  { %v337_v56 = vmul.f32 %v705_v54, %v336_v53 }
 0x39e   :  { %v339_v57 = vmul.f32 %v337_v56, %v324_v47  ;;  %v338_v58 = vmul.f32 %v337_v56, %v319_v18 }
 0x3a0   :  { %v344_v0 = vsub.f32 %v343_v55, %v339_v57 }
 0x3a2   :  { %v345_v59 = vadd.f32 %v344_v0, %v338_v58 }
 0x3a4   :  { %v346_v60 = vmax.f32 %v345_v59, 0.0 }
 0x3a6   :  { %615 = vmatmul.mubr.f32.vlgmr.msra.gmra.mrb[2].mxu0 %v346_v60 }
 0x479   :  { %v436_v62 = vpop.f32.mrb[2].mxu0 }
 0x47a   :  { %v437_v63 = vadd.f32 %v460_v61, %v436_v62  ;;  %v616_v1 = vpop.f32.mrb[3].mxu0 }
 0x47c   :  { %706 = vtanh.f32 %v437_v63 }
 0x486   :  { %v707_v2 = vpop.eup %706 }
 0x487   :  { %441 = vst [vmem:[#allocation14] sm:$0xff] %v707_v2 }
 0x488   :  { %873 = shalt.err (!%p870_p4)
}
 0x489   :  { %s874_s14 = scalar_lea.hbm %s1103_s7, 128 }
 0x48a   :  { %p875_p5 = scmp.ne.s32.totalorder %s1103_s7, %s874_s14  ;;  %p878_p6 = scmp.lt.u32.totalorder %s874_s14, %s1103_s7 }
 0x48c   :  { %p880_p7 = pnand %p878_p6, %p875_p5 }
 0x48e   :  { %883 = shalt.err (!%p880_p7)
}
 0x48f   :  { %451 = dma.vmem_to_hbm [thread:$0]  %s449_s9, 128, %s1103_s7, [#allocation4]  }
 0x490   :  { %892 = dma.done.wait [#allocation4], 128  }
 0x491   :  { %893 = vsyncadd [#allocation4], 4294967168 }
 0x492   :  { %455 = vsyncpa [#allocation3], 1 }
 0x493   :  { %456 = vsyncpa [#allocation6], 1 }
 0x494   :  { %457 = vsyncpa [#allocation9], 1 }
 0x495   :  { %458 = vsyncpa [#allocation12], 1 }
 0x496   :  { %459 = vsyncpa [#allocation4], 1 }

</bundles_post_ra>
